<compile_context>
chip_gen: v7x
topology: tpu7x:2x2x1
jax: 0.10.0
libtpu: 0.0.40
codegen_flags: <defaults>
</compile_context>

<pallas_src>
import functools

import numpy as np
import jax
import jax.numpy as jnp
from jax import lax
from jax.experimental import pallas as pl
from jax.experimental.pallas import tpu as pltpu


# ------------------------------------------------------------------ params --
def _svls_constants(ksize=3, sigma=1.0):
    """Separable taps of the SVLS kernel, with the 1/denom normalization
    pre-folded into the second-pass taps and the centre correction.
    Matches the PyTorch get_gaussian_kernel_2d / get_svls_filter_2d math."""
    assert ksize == 3, "only ksize=3 (module default) implemented"  # TODO(synk): general odd ksize
    c = ksize // 2
    xs = np.arange(ksize, dtype=np.float64)
    mean = (ksize - 1) / 2.0
    e = np.exp(-((xs - mean) ** 2) / (2.0 * sigma ** 2 + 1e-16))
    g1d = e / e.sum()                      # outer(g1d, g1d) == normalized 2D Gaussian
    g_cc = float(g1d[c] * g1d[c])          # Gaussian centre tap
    nb = 1.0 - g_cc + 1e-16                # neighbors_sum -> new centre tap
    c_corr = nb - g_cc                     # centre replacement as one additive FMA
    denom = (1.0 - g_cc) + nb              # sum of the modified (SVLS) kernel
    inv = 1.0 / denom                      # svls(x) = conv(x, modified)/denom
    return dict(
        g_edge=float(g1d[0]),
        g_center=float(g1d[c]),
        g_edge_n=float(g1d[0] * inv),
        g_center_n=float(g1d[c] * inv),
        c_corr_n=float(c_corr * inv),
    )


# ------------------------------------------------------------------ kernel --
def _svls_ce_kernel(lab_ref, inp_ref, out_ref, *, h, w, g_edge, g_center,
                    g_edge_n, g_center_n, c_corr_n, eps):
    # lab_ref / inp_ref : (Nb, Cb, H, W) blocks; out_ref : (1, 1, 8, 128).
    nb, cb = lab_ref.shape[0], lab_ref.shape[1]
    # Cast in VMEM (inputs arrive in native dtype); merge leading dims (free).
    lab = lab_ref[...].astype(jnp.float32).reshape(nb * cb, h, w)
    inp = inp_ref[...].astype(jnp.float32).reshape(nb * cb, h, w)

    shp = lab.shape
    row = lax.broadcasted_iota(jnp.int32, shp, 1)
    col = lax.broadcasted_iota(jnp.int32, shp, 2)
    first_row, last_row = row == 0, row == (h - 1)
    first_col, last_col = col == 0, col == (w - 1)

    def clamped_nbr_sum(x, axis, n, first, last):
        """x[clamp(i-1)] + x[clamp(i+1)] along `axis` (replicate padding),
        built from circular XLU rolls (direction-agnostic: both shifts summed)
        plus a boundary fix from two 1-row/col slices."""
        if n == 1:
            return x + x
        s = pltpu.roll(x, 1, axis=axis) + pltpu.roll(x, n - 1, axis=axis)
        lo = lax.index_in_dim(x, 0, axis, keepdims=True)
        hi = lax.index_in_dim(x, n - 1, axis, keepdims=True)
        d = jnp.broadcast_to(lo - hi, x.shape)
        return s + jnp.where(first, d, jnp.where(last, -d, 0.0))

    # Separable 3x3 Gaussian with replicate padding; the SVLS centre swap is
    # one FMA (c_corr_n * lab) and the 1/denom normalization is pre-folded
    # into the second-pass taps.
    tmp = g_edge * clamped_nbr_sum(lab, 1, h, first_row, last_row) + g_center * lab
    svls = (g_edge_n * clamped_nbr_sum(tmp, 2, w, first_col, last_col)
            + g_center_n * tmp + c_corr_n * lab)
    # NOTE: svls(1 - x) == 1 - svls(x) ONLY because the normalized SVLS kernel
    # sums to 1 and replicate padding preserves constants; this replaces the
    # reference's channel concat (labels, 1-labels) analytically.

    log_p = jnp.log(inp + eps)              # matches torch.log(cat(x,1-x)+eps)
    log_1p = jnp.log((1.0 - inp) + eps)
    # CE over both channel halves: svls*log_p + (1-svls)*log_1p, rewritten to
    # save a subtract/multiply; the global negation lives in the JAX glue.
    ce = log_1p + svls * (log_p - log_1p)

    # Per-tile partial sum, stored lane-dense in one (8,128) tile.
    out_ref[...] = jnp.zeros(out_ref.shape, out_ref.dtype) + jnp.sum(ce)


# ------------------------------------------------------------------ tiling --
def _pick_block(n, c, h, w, target_bytes=2 << 20):
    """Pick (Nb, Cb): batch several N per step when planes are small, tile C
    (depthwise conv -> no halo needed) when a full-C block would be big."""
    plane = h * w * 4                      # f32 compute footprint per plane
    if c * plane > target_bytes:
        cb = 1
        for d in range(1, c + 1):
            if c % d == 0 and d * plane <= target_bytes:
                cb = d
        return 1, cb
    nb = 1
    for d in range(1, n + 1):
        if n % d == 0 and d * c * plane <= target_bytes:
            nb = d
    return nb, c


# ----------------------------------------------------------------- wrapper --
def ce_loss_with_svls_2d(inputs, labels, *, classes=None, ksize=3, sigma=1.0,
                         eps=1e-8):
    """Forward of CELossWithSVLS_2D. inputs/labels: (N, C, H, W) probability
    maps; the module's `classes` equals 2*C (the reference concatenates x with
    1-x along channels — derived analytically inside the kernel)."""
    inputs = jnp.asarray(inputs)
    labels = jnp.asarray(labels)
    N, C, H, W = inputs.shape
    assert labels.shape == inputs.shape
    if classes is not None:
        assert classes == 2 * C, "SVLS filter channel count must equal 2*C"

    consts = _svls_constants(ksize=ksize, sigma=sigma)
    kern = functools.partial(_svls_ce_kernel, h=H, w=W, eps=float(eps), **consts)

    # No wrapper upcast: ship native dtypes (bf16 labels are exact for 0/1
    # masks) and cast to f32 inside the kernel -> up to 2x less input DMA.
    in_isz = inputs.dtype.itemsize
    lab_isz = labels.dtype.itemsize

    nb, cb = _pick_block(N, C, H, W)
    gn, gc = N // nb, C // cb

    # VMEM budget from the real live set: double-buffered native-dtype inputs
    # plus ~8 live f32 full-block temporaries, capped at 48 MiB (v7x: 64 MiB).
    block_elems = nb * cb * H * W
    dma_bytes = 2 * block_elems * (in_isz + lab_isz)
    vmem_limit = int(min(max(dma_bytes + 8 * block_elems * 4 + (4 << 20),
                             32 << 20), 48 << 20))

    nelem = N * C * H * W
    cost = pl.CostEstimate(
        flops=int(22 * nelem),
        transcendentals=int(2 * nelem),
        bytes_accessed=int(nelem * (in_isz + lab_isz) + gn * gc * 8 * 128 * 4),
    )

    # TODO(synk): for single huge planes (H*W >> VMEM even at Cb=1) add an
    # H-tile axis with a 1-row halo; and for tiny W, re-layout so a larger
    # folded dim lands on lanes (lane-dense compute).
    partial = pl.pallas_call(
        kern,
        out_shape=jax.ShapeDtypeStruct((gn, gc, 8, 128), jnp.float32),
        grid_spec=pltpu.PrefetchScalarGridSpec(
            num_scalar_prefetch=0,
            grid=(gn, gc),
            in_specs=[
                pl.BlockSpec((nb, cb, H, W), lambda n, c: (n, c, 0, 0)),   # labels
                pl.BlockSpec((nb, cb, H, W), lambda n, c: (n, c, 0, 0)),   # inputs
            ],
            out_specs=pl.BlockSpec((1, 1, 8, 128), lambda n, c: (n, c, 0, 0)),
        ),
        compiler_params=pltpu.CompilerParams(
            dimension_semantics=("parallel", "parallel"),
            vmem_limit_bytes=vmem_limit,
        ),
        cost_estimate=cost,
    )(labels, inputs)

    # -sum over channels, mean over N*H*W (negation folded out of the kernel).
    return -(partial[:, :, 0, 0].sum()) / (N * H * W)


# --------------------------------------------------------------- reference --
def _reference_loss(inputs, labels, ksize=3, sigma=1.0, eps=1e-8):
    """Pure-JAX transcription of the PyTorch module (for verification)."""
    k = np.arange(ksize, dtype=np.float64)
    mean = (ksize - 1) / 2.0
    e = np.exp(-((k - mean) ** 2) / (2.0 * sigma ** 2 + 1e-16))
    g1 = e / e.sum()
    g2 = np.outer(g1, g1)
    c = ksize // 2
    nbsum = 1.0 - g2[c, c] + 1e-16
    g2[c, c] = nbsum
    svls_kernel = (g2 / nbsum).astype(np.float32)
    ksum = float(svls_kernel.sum())

    lab2 = jnp.concatenate([labels, 1.0 - labels], axis=1).astype(jnp.float32)
    inp2 = jnp.concatenate([inputs, 1.0 - inputs], axis=1).astype(jnp.float32)
    pad = ksize // 2
    lab_p = jnp.pad(lab2, ((0, 0), (0, 0), (pad, pad), (pad, pad)), mode="edge")
    weight = jnp.broadcast_to(jnp.asarray(svls_kernel)[None, None],
                              (lab2.shape[1], 1, ksize, ksize))
    svls = lax.conv_general_dilated(
        lab_p, weight, window_strides=(1, 1), padding="VALID",
        dimension_numbers=("NCHW", "OIHW", "NCHW"),
        feature_group_count=lab2.shape[1],
    ) / ksum
    logp = jnp.log(inp2 + eps)
    return (-(svls * logp).sum(axis=1)).mean()


# -------------------------------------------------------------------- main --
if __name__ == "__main__":
    key = jax.random.PRNGKey(0)
    k1, k2 = jax.random.split(key)

    # classes = 4 in the reference module corresponds to C = 2 input channels
    # (the forward concatenates x with 1-x along the channel dim).
    N, C, H, W = 2, 2, 16, 16
    inputs = jax.random.uniform(
        k1, (N, C, H, W), dtype=jnp.float32, minval=0.01, maxval=0.99
    )
    labels = (jax.random.uniform(k2, (N, C, H, W), dtype=jnp.float32) > 0.5).astype(
        jnp.float32
    )

    loss = ce_loss_with_svls_2d(inputs, labels, classes=2 * C, ksize=3, sigma=1.0)
    jax.block_until_ready(loss)

    ref = _reference_loss(inputs, labels, ksize=3, sigma=1.0)
    np.testing.assert_allclose(np.asarray(loss), np.asarray(ref),
                               rtol=1e-3, atol=1e-5)
    print("KERNEL_OK")
</pallas_src>

<mosaic_0001>
module attributes {stable_mosaic.version = 11 : i64} {
  func.func @_svls_ce_kernel(%arg0: i32, %arg1: i32, %arg2: memref<2x2x16x16xf32, #tpu.memory_space<vmem>>, %arg3: memref<2x2x16x16xf32, #tpu.memory_space<vmem>>, %arg4: memref<1x1x8x128xf32, #tpu.memory_space<vmem>>) attributes {dimension_semantics = [#tpu.dimension_semantics<parallel>, #tpu.dimension_semantics<parallel>], iteration_bounds = array<i64: 1, 1>, scalar_prefetch = 0 : i64, scratch_operands = 0 : i64, tpu.core_type = #tpu.core_type<tc>, window_params = [{transform_indices = @transform_0, window_bounds = array<i64: 2, 2, 16, 16>}, {transform_indices = @transform_1, window_bounds = array<i64: 2, 2, 16, 16>}, {transform_indices = @transform_2, window_bounds = array<i64: 1, 1, 8, 128>}]} {
    %c0 = arith.constant 0 : index
    %c0_0 = arith.constant 0 : index
    %c0_1 = arith.constant 0 : index
    %c0_2 = arith.constant 0 : index
    %0 = vector.load %arg2[%c0, %c0_0, %c0_1, %c0_2] : memref<2x2x16x16xf32, #tpu.memory_space<vmem>>, vector<2x2x16x16xf32>
    %1 = vector.shape_cast %0 : vector<2x2x16x16xf32> to vector<4x16x16xf32>
    %c0_3 = arith.constant 0 : index
    %c0_4 = arith.constant 0 : index
    %c0_5 = arith.constant 0 : index
    %c0_6 = arith.constant 0 : index
    %2 = vector.load %arg3[%c0_3, %c0_4, %c0_5, %c0_6] : memref<2x2x16x16xf32, #tpu.memory_space<vmem>>, vector<2x2x16x16xf32>
    %3 = vector.shape_cast %2 : vector<2x2x16x16xf32> to vector<4x16x16xf32>
    %4 = tpu.iota {dimensions = array<i32: 1>} : vector<4x16x16xi32>
    %5 = tpu.iota {dimensions = array<i32: 2>} : vector<4x16x16xi32>
    %c0_i32 = arith.constant 0 : i32
    %6 = vector.broadcast %c0_i32 : i32 to vector<4x16x16xi32>
    %7 = arith.cmpi eq, %4, %6 : vector<4x16x16xi32>
    %c15_i32 = arith.constant 15 : i32
    %8 = vector.broadcast %c15_i32 : i32 to vector<4x16x16xi32>
    %9 = arith.cmpi eq, %4, %8 : vector<4x16x16xi32>
    %c0_i32_7 = arith.constant 0 : i32
    %10 = vector.broadcast %c0_i32_7 : i32 to vector<4x16x16xi32>
    %11 = arith.cmpi eq, %5, %10 : vector<4x16x16xi32>
    %c15_i32_8 = arith.constant 15 : i32
    %12 = vector.broadcast %c15_i32_8 : i32 to vector<4x16x16xi32>
    %13 = arith.cmpi eq, %5, %12 : vector<4x16x16xi32>
    %c1_i32 = arith.constant 1 : i32
    %14 = tpu.dynamic_rotate %1 by %c1_i32 dim 1 : vector<4x16x16xf32>, i32 -> vector<4x16x16xf32>
    %c15_i32_9 = arith.constant 15 : i32
    %15 = tpu.dynamic_rotate %1 by %c15_i32_9 dim 1 : vector<4x16x16xf32>, i32 -> vector<4x16x16xf32>
    %16 = arith.addf %14, %15 : vector<4x16x16xf32>
    %17 = vector.extract_strided_slice %1 {offsets = [0, 0, 0], sizes = [4, 1, 16], strides = [1, 1, 1]} : vector<4x16x16xf32> to vector<4x1x16xf32>
    %18 = vector.extract_strided_slice %1 {offsets = [0, 15, 0], sizes = [4, 1, 16], strides = [1, 1, 1]} : vector<4x16x16xf32> to vector<4x1x16xf32>
    %19 = arith.subf %17, %18 : vector<4x1x16xf32>
    %20 = vector.shape_cast %19 : vector<4x1x16xf32> to vector<4x1x16xf32>
    %21 = vector.broadcast %20 : vector<4x1x16xf32> to vector<4x16x16xf32>
    %cst = arith.constant 0.000000e+00 : f32
    %22 = vector.broadcast %cst : f32 to vector<4x16x16xf32>
    %23 = arith.subf %22, %21 : vector<4x16x16xf32>
    %cst_10 = arith.constant 0.000000e+00 : f32
    %24 = vector.broadcast %cst_10 : f32 to vector<4x16x16xf32>
    %25 = arith.select %9, %23, %24 : vector<4x16x16xi1>, vector<4x16x16xf32>
    %26 = arith.select %7, %21, %25 : vector<4x16x16xi1>, vector<4x16x16xf32>
    %27 = arith.addf %16, %26 : vector<4x16x16xf32>
    %cst_11 = arith.constant 0.274068624 : f32
    %28 = vector.broadcast %cst_11 : f32 to vector<4x16x16xf32>
    %29 = arith.mulf %28, %27 : vector<4x16x16xf32>
    %cst_12 = arith.constant 0.451862752 : f32
    %30 = vector.broadcast %cst_12 : f32 to vector<4x16x16xf32>
    %31 = arith.mulf %30, %1 : vector<4x16x16xf32>
    %32 = arith.addf %29, %31 : vector<4x16x16xf32>
    %c1_i32_13 = arith.constant 1 : i32
    %33 = tpu.dynamic_rotate %32 by %c1_i32_13 dim 2 : vector<4x16x16xf32>, i32 -> vector<4x16x16xf32>
    %c15_i32_14 = arith.constant 15 : i32
    %34 = tpu.dynamic_rotate %32 by %c15_i32_14 dim 2 : vector<4x16x16xf32>, i32 -> vector<4x16x16xf32>
    %35 = arith.addf %33, %34 : vector<4x16x16xf32>
    %36 = vector.extract_strided_slice %32 {offsets = [0, 0, 0], sizes = [4, 16, 1], strides = [1, 1, 1]} : vector<4x16x16xf32> to vector<4x16x1xf32>
    %37 = vector.extract_strided_slice %32 {offsets = [0, 0, 15], sizes = [4, 16, 1], strides = [1, 1, 1]} : vector<4x16x16xf32> to vector<4x16x1xf32>
    %38 = arith.subf %36, %37 : vector<4x16x1xf32>
    %39 = vector.shape_cast %38 : vector<4x16x1xf32> to vector<4x16x1xf32>
    %40 = vector.broadcast %39 : vector<4x16x1xf32> to vector<4x16x16xf32>
    %cst_15 = arith.constant 0.000000e+00 : f32
    %41 = vector.broadcast %cst_15 : f32 to vector<4x16x16xf32>
    %42 = arith.subf %41, %40 : vector<4x16x16xf32>
    %cst_16 = arith.constant 0.000000e+00 : f32
    %43 = vector.broadcast %cst_16 : f32 to vector<4x16x16xf32>
    %44 = arith.select %13, %42, %43 : vector<4x16x16xi1>, vector<4x16x16xf32>
    %45 = arith.select %11, %40, %44 : vector<4x16x16xi1>, vector<4x16x16xf32>
    %46 = arith.addf %35, %45 : vector<4x16x16xf32>
    %cst_17 = arith.constant 0.172192588 : f32
    %47 = vector.broadcast %cst_17 : f32 to vector<4x16x16xf32>
    %48 = arith.mulf %47, %46 : vector<4x16x16xf32>
    %cst_18 = arith.constant 0.283897579 : f32
    %49 = vector.broadcast %cst_18 : f32 to vector<4x16x16xf32>
    %50 = arith.mulf %49, %32 : vector<4x16x16xf32>
    %51 = arith.addf %48, %50 : vector<4x16x16xf32>
    %cst_19 = arith.constant 0.371717244 : f32
    %52 = vector.broadcast %cst_19 : f32 to vector<4x16x16xf32>
    %53 = arith.mulf %52, %1 : vector<4x16x16xf32>
    %54 = arith.addf %51, %53 : vector<4x16x16xf32>
    %cst_20 = arith.constant 9.99999993E-9 : f32
    %55 = vector.broadcast %cst_20 : f32 to vector<4x16x16xf32>
    %56 = arith.addf %3, %55 : vector<4x16x16xf32>
    %57 = math.log %56 : vector<4x16x16xf32>
    %cst_21 = arith.constant 1.000000e+00 : f32
    %58 = vector.broadcast %cst_21 : f32 to vector<4x16x16xf32>
    %59 = arith.subf %58, %3 : vector<4x16x16xf32>
    %cst_22 = arith.constant 9.99999993E-9 : f32
    %60 = vector.broadcast %cst_22 : f32 to vector<4x16x16xf32>
    %61 = arith.addf %59, %60 : vector<4x16x16xf32>
    %62 = math.log %61 : vector<4x16x16xf32>
    %63 = arith.subf %57, %62 : vector<4x16x16xf32>
    %64 = arith.mulf %54, %63 : vector<4x16x16xf32>
    %65 = arith.addf %62, %64 : vector<4x16x16xf32>
    %cst_23 = arith.constant 0.000000e+00 : f32
    %66 = vector.broadcast %cst_23 : f32 to vector<1x1x8x128xf32>
    %67 = vector.shape_cast %65 : vector<4x16x16xf32> to vector<1x4x16x16xf32>
    %cst_24 = arith.constant dense<0.000000e+00> : vector<1xf32>
    %68 = vector.multi_reduction <add>, %67, %cst_24 [1, 2, 3] : vector<1x4x16x16xf32> to vector<1xf32>
    %69 = vector.shape_cast %68 : vector<1xf32> to vector<1x1x1x1xf32>
    %70 = vector.extract %69[0, 0, 0, 0] : f32 from vector<1x1x1x1xf32>
    %71 = vector.broadcast %70 : f32 to vector<1x1x8x128xf32>
    %72 = arith.addf %66, %71 : vector<1x1x8x128xf32>
    %c0_25 = arith.constant 0 : index
    %c0_26 = arith.constant 0 : index
    %c0_27 = arith.constant 0 : index
    %c0_28 = arith.constant 0 : index
    %73 = vector.load %arg4[%c0_25, %c0_26, %c0_27, %c0_28] : memref<1x1x8x128xf32, #tpu.memory_space<vmem>>, vector<1x1x8x128xf32>
    tpu.vector_store %arg4[%c0_25, %c0_26, %c0_27, %c0_28], %72 {strides = array<i32>} : memref<1x1x8x128xf32, #tpu.memory_space<vmem>>, vector<1x1x8x128xf32>,
    return
  }
  func.func @transform_0(%arg0: i32, %arg1: i32) -> (i32, i32, i32, i32) {
    %c0_i32 = arith.constant 0 : i32
    %c0_i32_0 = arith.constant 0 : i32
    %c0_i32_1 = arith.constant 0 : i32
    return %arg0, %arg1, %c0_i32, %c0_i32_0 : i32, i32, i32, i32
  }
  func.func @transform_1(%arg0: i32, %arg1: i32) -> (i32, i32, i32, i32) {
    %c0_i32 = arith.constant 0 : i32
    %c0_i32_0 = arith.constant 0 : i32
    %c0_i32_1 = arith.constant 0 : i32
    return %arg0, %arg1, %c0_i32, %c0_i32_0 : i32, i32, i32, i32
  }
  func.func @transform_2(%arg0: i32, %arg1: i32) -> (i32, i32, i32, i32) {
    %c0_i32 = arith.constant 0 : i32
    %c0_i32_0 = arith.constant 0 : i32
    %c0_i32_1 = arith.constant 0 : i32
    return %arg0, %arg1, %c0_i32, %c0_i32_0 : i32, i32, i32, i32
  }
}

</mosaic_0001>

<bundles_post_ra>
// kernel: tpu_custom_call.1
= control target key start
LH: loop header
LB: loop body
LE: loop exit
PB: predicated region body
PF: predicated region fallthrough
CT: control target
= control target key end

     0   :  { %7 = vsyncpa [#allocation3], 0  ;;  %s1295_s0 = inlined_call_operand.hbm [shape: f32[2,2,16,16], index: 0, kind: input, shape index: {}]   ;;  %s1296_s1 = inlined_call_operand.hbm [shape: f32[2,2,16,16], index: 1, kind: input, shape index: {}]   ;;  %s1297_s2 = inlined_call_operand.hbm [shape: f32[1,1,8,128], index: 2, kind: output, shape index: {}]  }
   0x1   :  { %8 = vsyncpa [#allocation6], 0 }
   0x2   :  { %9 = vsyncpa [#allocation4], 0  ;;  %s836_s9 = smov [#allocation2]   ;;  %s764_s13 = scalar_lea.hbm %s1295_s0, 1024 }
   0x3   :  { %s15_s10 = sshll.u32 %s836_s9, 4  ;;  %p765_p0 = scmp.ne.s32.totalorder %s1295_s0, %s764_s13  ;;  %s16_s10 = int_to_ptr.vmem [resolvable:$true] %s15_s10 }
   0x4   :  { %p768_p1 = scmp.lt.u32.totalorder %s764_s13, %s1295_s0 }
   0x6   :  { %p770_p2 = pnand %p768_p1, %p765_p0 }
   0x8   :  { %773 = shalt.err (!%p770_p2)
}
   0x9   :  { %s774_s18 = scalar_lea.vmem %s16_s10, 1024  ;;  %p779_p4 = scmp.lt.s32.totalorder %s16_s10, %s16_s10 }
   0xa   :  { %p775_p3 = scmp.ne.s32.totalorder %s16_s10, %s774_s18  ;;  %p780_p5 = scmp.lt.s32.totalorder %s774_s18, %s774_s18 }
   0xc   :  { %p781_p6 = por %p780_p5, %p779_p4 }
   0xe   :  { %p782_p7 = pnand %p781_p6, %p775_p3 }
  0x10   :  { %785 = shalt.err (!%p782_p7)
}
  0x11   :  { %s837_s19 = smov 128   ;;  %s838_s20 = smov 8  }
  0x12   :  { %21 = dma.hbm_to_vmem [thread:$0]  %s1295_s0, 1024, %s16_s10, [#allocation3], %s837_s19, %s837_s19, %s838_s20  }
  0x13   :  { %s839_s23 = smov [#allocation5]   ;;  %s786_s27 = scalar_lea.hbm %s1296_s1, 1024 }
  0x14   :  { %s27_s24 = sshll.u32 %s839_s23, 4  ;;  %p787_p8 = scmp.ne.s32.totalorder %s1296_s1, %s786_s27  ;;  %s28_s24 = int_to_ptr.vmem [resolvable:$true] %s27_s24 }
  0x15   :  { %p790_p9 = scmp.lt.u32.totalorder %s786_s27, %s1296_s1 }
  0x17   :  { %p792_p10 = pnand %p790_p9, %p787_p8 }
  0x19   :  { %795 = shalt.err (!%p792_p10)
}
  0x1a   :  { %s796_s4 = scalar_lea.vmem %s28_s24, 1024  ;;  %p801_p12 = scmp.lt.s32.totalorder %s28_s24, %s28_s24 }
  0x1b   :  { %p797_p11 = scmp.ne.s32.totalorder %s28_s24, %s796_s4  ;;  %p802_p13 = scmp.lt.s32.totalorder %s796_s4, %s796_s4 }
  0x1d   :  { %p803_p0 = por %p802_p13, %p801_p12 }
  0x1f   :  { %p804_p1 = pnand %p803_p0, %p797_p11 }
  0x21   :  { %807 = shalt.err (!%p804_p1)
}
  0x22   :  { %33 = dma.hbm_to_vmem [thread:$0]  %s1296_s1, 1024, %s28_s24, [#allocation6], %s837_s19, %s837_s19, %s838_s20  }
  0x23   :  { %830 = dma.done.wait [#allocation3], 1024  }
  0x24   :  { %831 = vsyncadd [#allocation3], 4294966272 }
  0x25   :  { %832 = dma.done.wait [#allocation6], 1024  }
  0x26   :  { %833 = vsyncadd [#allocation6], 4294966272  ;;  %v56_v0 = vlaneseq  ;;  %v892_v3 = vld [vmem:[#allocation2 + $0x10] sm:$0xff]  ;;  %v894_v4 = vld [vmem:[#allocation2 + $0x18] sm:$0xff]  ;;  %s840_s1 = smov 113   ;;  %s841_s6 = smov 16  }
  0x27   :  { %v901_v6 = vld [vmem:[#allocation2] sm:$0xff]  ;;  %v68_v7 = vrot.slane %v892_v3, 7  ;;  %v72_v8 = vrot.slane %v894_v4, 7  ;;  %v85_v9 = vrot.slane %v892_v3, 1  ;;  %v89_v10 = vrot.slane %v894_v4, 1  ;;  %v907_v11 = vld [vmem:[#allocation2 + $0x8] sm:$0xff] }
  0x28   :  { %v886_v1 = vshrl.u32 %v56_v0, 7  ;;  %v67_v12 = vrot.slane %v901_v6, 7  ;;  %v71_v13 = vrot.slane %v907_v11, 7  ;;  %v84_v14 = vrot.slane %v901_v6, 1  ;;  %v912_v15 = vld [vmem:[#allocation2 + $0x20] sm:$0xff]  ;;  %v914_v16 = vld [vmem:[#allocation2 + $0x28] sm:$0xff] }
  0x29   :  { %v122_v19 = vsub.f32 %v892_v3, %v72_v8  ;;  %v88_v20 = vrot.slane %v907_v11, 1  ;;  %v179_v22 = vmul.f32 0.45186275, %v892_v3  ;;  %v69_v27 = vrot.slane %v912_v15, 7  ;;  %v964_v61 = vld [vmem:[#allocation2 + $0x30] sm:$0xff]  ;;  %s843_s7 = smov 15  }
  0x2a   :  { %v889_v2 = vadd.s32 8, %v886_v1  ;;  %vm61_vm0 = vcmp.eq.s32.totalorder %v886_v1, 0  ;;  %vm75_vm1 = vcmp.lt.s32.totalorder %v886_v1, 1  ;;  %vm92_vm2 = vcmp.lt.s32.totalorder %v886_v1, 7  ;;  %s844_s8 = smov 14   ;;  %s845_s9 = smov [#allocation7]  }
  0x2b   :  { %v899_v5 = vsub.s32 0, %v886_v1  ;;  %v81_v17 = vsel %vm75_vm1, %v72_v8, %v68_v7  ;;  %v94_v18 = vsel %vm92_vm2, %v85_v9, %v89_v10  ;;  %v80_v23 = vsel %vm75_vm1, %v71_v13, %v67_v12  ;;  %s708_s10 = sshll.u32 %s845_s9, 4  ;;  %s709_s10 = int_to_ptr.vmem [resolvable:$true] %s708_s10 }
  0x2c   :  { %vm64_vm3 = vcmp.eq.s32.totalorder %v889_v2, 15  ;;  %v103_v21 = vadd.f32 %v94_v18, %v81_v17  ;;  %v121_v24 = vsub.f32 %v901_v6, %v71_v13  ;;  %v93_v26 = vsel %vm92_vm2, %v84_v14, %v88_v20  ;;  %s808_s12 = scalar_lea.vmem %s709_s10, 128  ;;  %p813_p3 = scmp.lt.s32.totalorder %s709_s10, %s709_s10 }
  0x2d   :  { %v132_v25 = vrot.slane %v122_v19, %v899_v5  ;;  %v73_v28 = vrot.slane %v914_v16, 7  ;;  %v101_v29 = vadd.f32 %v93_v26, %v80_v23  ;;  %v86_v31 = vrot.slane %v912_v15, 1  ;;  %p809_p2 = scmp.ne.s32.totalorder %s709_s10, %s808_s12  ;;  %p814_p4 = scmp.lt.s32.totalorder %s808_s12, %s808_s12 }
  0x2e   :  { %v128_v30 = vrot.slane %v121_v24, %v899_v5  ;;  %v90_v32 = vrot.slane %v914_v16, 1  ;;  %v177_v34 = vmul.f32 0.45186275, %v901_v6  ;;  %v77_v40 = vsel %vm75_vm1, %v68_v7, %v72_v8 }
  0x2f   :  { %v155_v33 = vsel %vm61_vm0, %v132_v25, 0.0  ;;  %v82_v35 = vsel %vm75_vm1, %v73_v28, %v69_v27  ;;  %v123_v36 = vsub.f32 %v912_v15, %v73_v28  ;;  %v98_v44 = vsel %vm92_vm2, %v89_v10, %v85_v9  ;;  %v972_v9 = vld [vmem:[#allocation2 + $0x38] sm:$0xff]  ;;  %p815_p5 = por %p814_p4, %p813_p3 }
  0x30   :  { %v163_v37 = vadd.f32 %v155_v33, %v103_v21  ;;  %v153_v38 = vsel %vm61_vm0, %v128_v30, 0.0  ;;  %v95_v39 = vsel %vm92_vm2, %v86_v31, %v90_v32  ;;  %v181_v46 = vmul.f32 0.45186275, %v912_v15 }
  0x31   :  { %v161_v41 = vadd.f32 %v153_v38, %v101_v29  ;;  %v105_v42 = vadd.f32 %v95_v39, %v82_v35  ;;  %v136_v43 = vrot.slane %v123_v36, %v899_v5  ;;  %v104_v47 = vadd.f32 %v98_v44, %v77_v40  ;;  %p816_p6 = pnand %p815_p5, %p809_p2 }
  0x32   :  { %v171_v45 = vmul.f32 0.27406862, %v163_v37  ;;  %v142_v48 = vsub.f32 0.0, %v132_v25  ;;  %v76_v51 = vsel %vm75_vm1, %v67_v12, %v71_v13  ;;  %v97_v52 = vsel %vm92_vm2, %v88_v20, %v84_v14 }
  0x33   :  { %v169_v49 = vmul.f32 0.27406862, %v161_v41  ;;  %v157_v50 = vsel %vm61_vm0, %v136_v43, 0.0  ;;  %v102_v56 = vadd.f32 %v97_v52, %v76_v51  ;;  %v180_v59 = vmul.f32 0.45186275, %v894_v4 }
  0x34   :  { %v957_v53 = vadd.f32 %v179_v22, %v171_v45  ;;  %v165_v54 = vadd.f32 %v157_v50, %v105_v42  ;;  %v148_v55 = vsel %vm64_vm3, %v142_v48, 0.0  ;;  %v141_v60 = vsub.f32 0.0, %v128_v30 }
  0x35   :  { %v961_v57 = vadd.f32 %v177_v34, %v169_v49  ;;  %v164_v58 = vadd.f32 %v148_v55, %v104_v47  ;;  %v78_v63 = vsel %vm75_vm1, %v69_v27, %v73_v28  ;;  %v99_v7 = vsel %vm92_vm2, %v90_v32, %v86_v31 }
  0x36   :  { %294 = vrot.lane.b32.xlu1 %v957_v53, %s840_s1  ;;  %v173_v62 = vmul.f32 0.27406862, %v165_v54  ;;  %v143_v8 = vsub.f32 0.0, %v136_v43  ;;  %v146_v12 = vsel %vm64_vm3, %v141_v60, 0.0  ;;  %v178_v13 = vmul.f32 0.45186275, %v907_v11 }
  0x37   :  { %290 = vrot.lane.b32.xlu0 %v961_v57, %s840_s1  ;;  %v172_v10 = vmul.f32 0.27406862, %v164_v58  ;;  %v106_v14 = vadd.f32 %v99_v7, %v78_v63  ;;  %v162_v18 = vadd.f32 %v146_v12, %v102_v56  ;;  %v70_v20 = vrot.slane %v964_v61, 7  ;;  %v48_v12 = vld [vmem:[#allocation5] sm:$0xff] }
  0x38   :  { %v979_v17 = vadd.f32 %v181_v46, %v173_v62  ;;  %v150_v19 = vsel %vm64_vm3, %v143_v8, 0.0  ;;  %v74_v22 = vrot.slane %v972_v9, 7  ;;  %v87_v23 = vrot.slane %v964_v61, 1 }
  0x39   :  { %v166_v21 = vadd.f32 %v150_v19, %v106_v14  ;;  %v988_v24 = vadd.f32 %v180_v59, %v172_v10  ;;  %v170_v25 = vmul.f32 0.27406862, %v162_v18  ;;  %v182_v26 = vmul.f32 0.45186275, %v914_v16 }
  0x3a   :  { %200 = vrot.lane.b32.xlu1 %v957_v53, %s841_s6  ;;  %v91_v27 = vrot.slane %v972_v9, 1  ;;  %v83_v29 = vsel %vm75_vm1, %v74_v22, %v70_v20  ;;  %v124_v30 = vsub.f32 %v964_v61, %v74_v22  ;;  %v79_v31 = vsel %vm75_vm1, %v70_v20, %v74_v22 }
  0x3b   :  { %298 = vrot.lane.b32.xlu0 %v979_v17, %s840_s1  ;;  %v174_v28 = vmul.f32 0.27406862, %v166_v21  ;;  %v999_v32 = vadd.f32 %v178_v13, %v170_v25  ;;  %v842_v41 = vmov 0   ;;  %v183_v43 = vmul.f32 0.45186275, %v964_v61 }
  0x3c   :  { %v96_v33 = vsel %vm92_vm2, %v87_v23, %v91_v27  ;;  %v100_v34 = vsel %vm92_vm2, %v91_v27, %v87_v23  ;;  %v140_v36 = vrot.slane %v124_v30, %v899_v5  ;;  %731 = vset.pattern.permute.xlu1 %v842_v41  ;;  %730 = vset.pattern.permute.xlu0 %v842_v41  ;;  %v184_v47 = vmul.f32 0.45186275, %v972_v9 }
  0x3d   :  { %v107_v35 = vadd.f32 %v96_v33, %v83_v29  ;;  %v1008_v37 = vadd.f32 %v182_v26, %v174_v28  ;;  %v108_v38 = vadd.f32 %v100_v34, %v79_v31  ;;  %vm193_vm4 = vcmask 1047680   ;;  %v50_v28 = vld [vmem:[#allocation5 + $0x10] sm:$0xff] }
  0x3e   :  { %296 = vrot.lane.b32.xlu1 %v988_v24, %s840_s1  ;;  %v159_v39 = vsel %vm61_vm0, %v140_v36, 0.0  ;;  %v144_v40 = vsub.f32 0.0, %v140_v36  ;;  %v554_v20 = vsub.f32 1.0, %v48_v12  ;;  %v530_v23 = vadd.f32 1e-08, %v48_v12 }
  0x3f   :  { %292 = vrot.lane.b32.xlu0 %v999_v32, %s840_s1  ;;  %v167_v42 = vadd.f32 %v159_v39, %v107_v35  ;;  %v556_v34 = vsub.f32 1.0, %v50_v28  ;;  %v434_v35 = vmul.f32 0.28389758, %v961_v57  ;;  %v532_v39 = vadd.f32 1e-08, %v50_v28 }
  0x40   :  { %v152_v5 = vsel %vm64_vm3, %v144_v40, 0.0  ;;  %v562_v27 = vadd.f32 1e-08, %v554_v20  ;;  %732 = vlog2.f32 %v530_v23  ;;  %v435_v41 = vmul.f32 0.28389758, %v999_v32 }
  0x41   :  { %v175_v44 = vmul.f32 0.27406862, %v167_v42  ;;  %v168_v45 = vadd.f32 %v152_v5, %v108_v38  ;;  %v49_v38 = vld [vmem:[#allocation5 + $0x8] sm:$0xff]  ;;  %v564_v40 = vadd.f32 1e-08, %v556_v34  ;;  %v51_v42 = vld [vmem:[#allocation5 + $0x18] sm:$0xff] }
  0x42   :  { %300 = vrot.lane.b32.xlu1 %v1008_v37, %s840_s1  ;;  %734 = vlog2.f32 %v562_v27  ;;  %v483_v12 = vmul.f32 0.37171724, %v907_v11  ;;  %v484_v20 = vmul.f32 0.37171724, %v892_v3  ;;  %v439_v23 = vmul.f32 0.28389758, %v1008_v37 }
  0x43   :  { %194 = vrot.lane.b32.xlu0 %v961_v57, %s841_s6  ;;  %v1021_v1 = vadd.f32 %v183_v43, %v175_v44  ;;  %v176_v46 = vmul.f32 0.27406862, %v168_v45  ;;  %v555_v43 = vsub.f32 1.0, %v49_v38  ;;  %736 = vlog2.f32 %v532_v39 }
  0x44   :  { %738 = vlog2.f32 %v564_v40  ;;  %v557_v44 = vsub.f32 1.0, %v51_v42  ;;  %v531_v45 = vadd.f32 1e-08, %v49_v38  ;;  %v485_v3 = vmul.f32 0.37171724, %v894_v4 }
  0x45   :  { %v1028_v2 = vadd.f32 %v184_v47, %v176_v46  ;;  %v482_v47 = vmul.f32 0.37171724, %v901_v6  ;;  %v486_v28 = vmul.f32 0.37171724, %v912_v15  ;;  %vm674_vm7 = vcmask 130048  }
  0x46   :  { %197 = vrot.lane.b32.xlu1 %v999_v32, %s841_s6  ;;  %740 = vlog2.f32 %v531_v45  ;;  %v1140_v45 = vand.u32 127, %v56_v0 }
  0x47   :  { %302 = vrot.lane.b32.xlu0 %v1021_v1, %s840_s1 }
  0x48   :  { %vm66_vm5 = vcmp.eq.s32.totalorder %v1140_v45, 15  ;;  %vm65_vm6 = vcmp.eq.s32.totalorder %v1140_v45, 0 }
  0x4a   :  { %203 = vrot.lane.b32.xlu1 %v988_v24, %s841_s6  ;;  %v733_v46 = vpop.eup %732 }
  0x4b   :  { %304 = vrot.lane.b32.xlu0 %v1028_v2, %s840_s1 }
  0x4e   :  { %209 = vrot.lane.b32.xlu1 %v1008_v37, %s841_s6 }
  0x4f   :  { %206 = vrot.lane.b32.xlu0 %v979_v17, %s841_s6 }
  0x52   :  { %215 = vrot.lane.b32.xlu1 %v1028_v2, %s841_s6 }
  0x53   :  { %212 = vrot.lane.b32.xlu0 %v1021_v1, %s841_s6 }
  0xa8   :  { %v295_v48 = vpop.permute.xlu1 %294 }
  0xa9   :  { %v291_v49 = vpop.permute.xlu0 %290  ;;  %v316_v54 = vsub.f32 %v957_v53, %v295_v48  ;;  %v563_v48 = vadd.f32 1e-08, %v555_v43 }
  0xaa   :  { %v314_v7 = vsub.f32 %v961_v57, %v291_v49  ;;  %v735_v49 = vpop.eup %734 }
  0xab   :  { %742 = vlog2.f32 %v563_v48 }
  0xac   :  { %v201_v50 = vpop.permute.xlu1 %200 }
  0xad   :  { %v299_v51 = vpop.permute.xlu0 %298  ;;  %v202_v52 = vsel %vm193_vm4, %v201_v50, %v957_v53  ;;  %v533_v50 = vadd.f32 1e-08, %v51_v42 }
  0xae   :  { %222 = vrot.lane.b32.xlu1 %v202_v52, %s841_s6  ;;  %v318_v58 = vsub.f32 %v979_v17, %v299_v51  ;;  %v565_v52 = vadd.f32 1e-08, %v557_v44 }
  0xaf   :  { %744 = vlog2.f32 %v533_v50 }
  0xb0   :  { %v297_v55 = vpop.permute.xlu1 %296  ;;  %746 = vlog2.f32 %v565_v52 }
  0xb1   :  { %v293_v56 = vpop.permute.xlu0 %292  ;;  %v317_v5 = vsub.f32 %v988_v24, %v297_v55  ;;  %v539_v55 = vmul.f32 0.6931472, %v733_v46 }
  0xb2   :  { %334 = vperm.xlu1 %731, %v316_v54   ;;  %v315_v21 = vsub.f32 %v999_v32, %v293_v56  ;;  %v437_v54 = vmul.f32 0.28389758, %v988_v24  ;;  %v1083_v56 = vmul.f32 0.6931472, %v735_v49 }
  0xb4   :  { %v1047_v59 = vpop.permute.xlu1 %300 }
  0xb5   :  { %v195_v60 = vpop.permute.xlu0 %194  ;;  %v319_v51 = vsub.f32 %v1008_v37, %v1047_v59  ;;  %v586_v59 = vsub.f32 %v539_v55, %v1083_v56 }
  0xb6   :  { %344 = vperm.xlu1 %731, %v318_v58   ;;  %v196_v62 = vsel %vm193_vm4, %v195_v60, %v961_v57  ;;  %v737_v58 = vpop.eup %736 }
  0xb7   :  { %218 = vrot.lane.b32.xlu0 %v196_v62, %s841_s6  ;;  %v739_v60 = vpop.eup %738  ;;  %v436_v62 = vmul.f32 0.28389758, %v957_v53 }
  0xb8   :  { %v198_v63 = vpop.permute.xlu1 %197 }
  0xb9   :  { %v199_v8 = vsel %vm193_vm4, %v198_v63, %v999_v32  ;;  %v303_v10 = vpop.permute.xlu0 %302  ;;  %v438_v63 = vmul.f32 0.28389758, %v979_v17 }
  0xba   :  { %220 = vrot.lane.b32.xlu1 %v199_v8, %s841_s6  ;;  %v320_v13 = vsub.f32 %v1021_v1, %v303_v10  ;;  %v1091_v8 = vmul.f32 0.6931472, %v739_v60  ;;  %v741_v10 = vpop.eup %740 }
  0xbb   :  { %324 = vperm.xlu0 %730, %v314_v7   ;;  %v543_v7 = vmul.f32 0.6931472, %v737_v58 }
  0xbc   :  { %v204_v14 = vpop.permute.xlu1 %203 }
  0xbd   :  { %v205_v18 = vsel %vm193_vm4, %v204_v14, %v988_v24  ;;  %v305_v19 = vpop.permute.xlu0 %304 }
  0xbe   :  { %224 = vrot.lane.b32.xlu1 %v205_v18, %s841_s6  ;;  %v321_v6 = vsub.f32 %v1028_v2, %v305_v19  ;;  %v588_v18 = vsub.f32 %v543_v7, %v1091_v8 }
  0xbf   :  { %354 = vperm.xlu0 %730, %v320_v13   ;;  %v743_v13 = vpop.eup %742 }
  0xc0   :  { %v210_v22 = vpop.permute.xlu1 %209  ;;  %v745_v14 = vpop.eup %744 }
  0xc1   :  { %v211_v25 = vsel %vm193_vm4, %v210_v22, %v1008_v37  ;;  %v207_v26 = vpop.permute.xlu0 %206  ;;  %v747_v19 = vpop.eup %746  ;;  %v1099_v22 = vmul.f32 0.6931472, %v743_v13 }
  0xc2   :  { %329 = vperm.xlu1 %731, %v315_v21   ;;  %v208_v29 = vsel %vm193_vm4, %v207_v26, %v979_v17  ;;  %v541_v21 = vmul.f32 0.6931472, %v741_v10  ;;  %v1103_v11 = vmul.f32 0.6931472, %v747_v19 }
  0xc3   :  { %228 = vrot.lane.b32.xlu0 %v211_v25, %s841_s6  ;;  %v545_v25 = vmul.f32 0.6931472, %v745_v14 }
  0xc4   :  { %v216_v30 = vpop.permute.xlu1 %215  ;;  %v587_v26 = vsub.f32 %v541_v21, %v1099_v22 }
  0xc5   :  { %v217_v31 = vsel %vm193_vm4, %v216_v30, %v1028_v2  ;;  %v213_v33 = vpop.permute.xlu0 %212  ;;  %v589_v27 = vsub.f32 %v545_v25, %v1103_v11 }
  0xc6   :  { %226 = vrot.lane.b32.xlu1 %v208_v29, %s841_s6  ;;  %v214_v36 = vsel %vm193_vm4, %v213_v33, %v1021_v1  ;;  %v440_v29 = vmul.f32 0.28389758, %v1021_v1 }
  0xc7   :  { %232 = vrot.lane.b32.xlu0 %v217_v31, %s841_s6 }
  0xca   :  { %230 = vrot.lane.b32.xlu1 %v214_v36, %s841_s6 }
  0xcb   :  { %450 = vrot.lane.b32.xlu0 %v434_v35, %s843_s7 }
  0xce   :  { %452 = vrot.lane.b32.xlu1 %v435_v41, %s843_s7 }
  0xcf   :  { %339 = vperm.xlu0 %730, %v317_v5  }
  0xd2   :  { %498 = vrot.lane.b32.xlu1 %v482_v47, %s843_s7 }
  0xd3   :  { %349 = vperm.xlu0 %730, %v319_v51  }
  0xd6   :  { %456 = vrot.lane.b32.xlu1 %v437_v54, %s843_s7 }
  0xd7   :  { %359 = vperm.xlu0 %730, %v321_v6   ;;  %v54_v6 = vld [vmem:[#allocation5 + $0x30] sm:$0xff] }
  0xda   :  { %602 = vrot.lane.b32.xlu1 %v586_v59, %s843_s7 }
  0xdb   :  { %454 = vrot.lane.b32.xlu0 %v436_v62, %s843_s7 }
  0xde   :  { %458 = vrot.lane.b32.xlu1 %v438_v63, %s843_s7  ;;  %v560_v63 = vsub.f32 1.0, %v54_v6 }
  0xdf   :  { %500 = vrot.lane.b32.xlu0 %v483_v12, %s843_s7 }
  0xe0   :  { %v568_v25 = vadd.f32 1e-08, %v560_v63 }
  0xe2   :  { %606 = vrot.lane.b32.xlu1 %v588_v18, %s843_s7 }
  0xe3   :  { %502 = vrot.lane.b32.xlu0 %v484_v20, %s843_s7  ;;  %v536_v20 = vadd.f32 1e-08, %v54_v6 }
  0xe6   :  { %460 = vrot.lane.b32.xlu1 %v439_v23, %s843_s7 }
  0xe7   :  { %604 = vrot.lane.b32.xlu0 %v587_v26, %s843_s7 }
  0xea   :  { %608 = vrot.lane.b32.xlu1 %v589_v27, %s843_s7 }
  0xeb   :  { %504 = vrot.lane.b32.xlu0 %v485_v3, %s843_s7 }
  0xef   :  { %506 = vrot.lane.b32.xlu0 %v486_v28, %s843_s7 }
  0xf3   :  { %462 = vrot.lane.b32.xlu0 %v440_v29, %s843_s7 }
 0x120   :  { %v223_v33 = vpop.permute.xlu1 %222 }
 0x121   :  { %v1125_v4 = vsel %vm193_vm4, %v223_v33, %v957_v53 }
 0x129   :  { %v219_v30 = vpop.permute.xlu0 %218 }
 0x12a   :  { %v1119_v31 = vsel %vm193_vm4, %v219_v30, %v961_v57  ;;  %v52_v57 = vld [vmem:[#allocation5 + $0x20] sm:$0xff] }
 0x12b   :  { %250 = vrot.lane.b32.xlu1 %v1119_v31, %s844_s8  ;;  %v558_v42 = vsub.f32 1.0, %v52_v57  ;;  %v534_v43 = vadd.f32 1e-08, %v52_v57 }
 0x12d   :  { %v566_v44 = vadd.f32 1e-08, %v558_v42  ;;  %748 = vlog2.f32 %v534_v43  ;;  %v487_v43 = vmul.f32 0.37171724, %v914_v16 }
 0x12f   :  { %254 = vrot.lane.b32.xlu1 %v1125_v4, %s844_s8  ;;  %750 = vlog2.f32 %v566_v44  ;;  %v441_v44 = vmul.f32 0.28389758, %v1028_v2 }
 0x131   :  { %v335_v15 = vpop.permute.xlu1 %334 }
 0x132   :  { %v364_v50 = vsub.f32 0.0, %v335_v15 }
 0x134   :  { %v372_v52 = vsel %vm66_vm5, %v364_v50, 0.0 }
 0x135   :  { %v345_v34 = vpop.permute.xlu1 %344  ;;  %v380_v62 = vsel %vm65_vm6, %v335_v15, %v372_v52 }
 0x136   :  { %v366_v54 = vsub.f32 0.0, %v345_v34 }
 0x137   :  { %v749_v59 = vpop.eup %748 }
 0x138   :  { %v374_v7 = vsel %vm66_vm5, %v366_v54, 0.0  ;;  %v547_v19 = vmul.f32 0.6931472, %v749_v59  ;;  %v489_v59 = vmul.f32 0.37171724, %v972_v9 }
 0x139   :  { %v221_v35 = vpop.permute.xlu1 %220  ;;  %v751_v14 = vpop.eup %750  ;;  %v382_v23 = vsel %vm65_vm6, %v345_v34, %v374_v7 }
 0x13a   :  { %v325_v36 = vpop.permute.xlu0 %324  ;;  %v1144_v48 = vsel %vm193_vm4, %v221_v35, %v999_v32  ;;  %v1197_v29 = vmul.f32 0.6931472, %v751_v14 }
 0x13b   :  { %v362_v55 = vsub.f32 0.0, %v325_v36 }
 0x13d   :  { %v225_v38 = vpop.permute.xlu1 %224  ;;  %v370_v10 = vsel %vm66_vm5, %v362_v55, 0.0 }
 0x13e   :  { %v1129_v39 = vpop.permute.xlu0 %354  ;;  %v1159_v32 = vsel %vm193_vm4, %v225_v38, %v988_v24  ;;  %v378_v21 = vsel %vm65_vm6, %v325_v36, %v370_v10  ;;  %v590_v38 = vsub.f32 %v547_v19, %v1197_v29 }
 0x13f   :  { %v368_v12 = vsub.f32 0.0, %v1129_v39 }
 0x141   :  { %v1131_v40 = vpop.permute.xlu1 %329  ;;  %v376_v27 = vsel %vm66_vm5, %v368_v12, 0.0 }
 0x142   :  { %v229_v41 = vpop.permute.xlu0 %228  ;;  %v363_v13 = vsub.f32 0.0, %v1131_v40  ;;  %v384_v15 = vsel %vm65_vm6, %v1129_v39, %v376_v27 }
 0x143   :  { %v1174_v60 = vsel %vm193_vm4, %v229_v41, %v1008_v37  ;;  %v55_v37 = vld [vmem:[#allocation5 + $0x38] sm:$0xff] }
 0x144   :  { %v561_v26 = vsub.f32 1.0, %v55_v37  ;;  %v371_v3 = vsel %vm66_vm5, %v363_v13, 0.0  ;;  %v537_v30 = vadd.f32 1e-08, %v55_v37 }
 0x145   :  { %v227_v5 = vpop.permute.xlu1 %226  ;;  %v379_v34 = vsel %vm65_vm6, %v1131_v40, %v371_v3  ;;  %v488_v40 = vmul.f32 0.37171724, %v964_v61 }
 0x146   :  { %v1135_v53 = vsel %vm193_vm4, %v227_v5, %v979_v17  ;;  %v233_v46 = vpop.permute.xlu0 %232  ;;  %v53_v17 = vld [vmem:[#allocation5 + $0x28] sm:$0xff]  ;;  %v569_v35 = vadd.f32 1e-08, %v561_v26 }
 0x147   :  { %258 = vrot.lane.b32.xlu0 %v1135_v53, %s844_s8  ;;  %v559_v0 = vsub.f32 1.0, %v53_v17  ;;  %v535_v24 = vadd.f32 1e-08, %v53_v17 }
 0x149   :  { %v231_v47 = vpop.permute.xlu1 %230  ;;  %v567_v58 = vadd.f32 1e-08, %v559_v0  ;;  %752 = vlog2.f32 %v535_v24 }
 0x14a   :  { %v1148_v49 = vsel %vm193_vm4, %v231_v47, %v1021_v1  ;;  %v1155_v51 = vpop.permute.xlu0 %450  ;;  %v1163_v1 = vsel %vm193_vm4, %v233_v46, %v1028_v2 }
 0x14b   :  { %252 = vrot.lane.b32.xlu0 %v1144_v48, %s844_s8  ;;  %262 = vrot.lane.b32.xlu1 %v1148_v49, %s844_s8  ;;  %754 = vlog2.f32 %v567_v58 }
 0x14c   :  { %756 = vlog2.f32 %v536_v20 }
 0x14d   :  { %758 = vlog2.f32 %v568_v25  ;;  %v453_v45 = vpop.permute.xlu1 %452 }
 0x14e   :  { %v340_v18 = vpop.permute.xlu0 %339  ;;  %760 = vlog2.f32 %v537_v30 }
 0x14f   :  { %256 = vrot.lane.b32.xlu0 %v1159_v32, %s844_s8  ;;  %264 = vrot.lane.b32.xlu1 %v1163_v1, %s844_s8  ;;  %v365_v28 = vsub.f32 0.0, %v340_v18  ;;  %762 = vlog2.f32 %v569_v35 }
 0x151   :  { %v373_v36 = vsel %vm66_vm5, %v365_v28, 0.0  ;;  %v499_v12 = vpop.permute.xlu1 %498 }
 0x152   :  { %v350_v33 = vpop.permute.xlu0 %349  ;;  %v381_v39 = vsel %vm65_vm6, %v340_v18, %v373_v36 }
 0x153   :  { %260 = vrot.lane.b32.xlu0 %v1174_v60, %s844_s8  ;;  %398 = vrot.lane.b32.xlu1 %v380_v62, %s843_s7  ;;  %v753_v57 = vpop.eup %752  ;;  %v367_v42 = vsub.f32 0.0, %v350_v33 }
 0x154   :  { %v549_v50 = vmul.f32 0.6931472, %v753_v57 }
 0x155   :  { %v755_v41 = vpop.eup %754  ;;  %v375_v47 = vsel %vm66_vm5, %v367_v42, 0.0  ;;  %v457_v13 = vpop.permute.xlu1 %456 }
 0x156   :  { %v360_v5 = vpop.permute.xlu0 %359  ;;  %v757_v46 = vpop.eup %756  ;;  %v1221_v0 = vmul.f32 0.6931472, %v755_v41  ;;  %v383_v61 = vsel %vm65_vm6, %v350_v33, %v375_v47 }
 0x157   :  { %394 = vrot.lane.b32.xlu0 %v378_v21, %s843_s7  ;;  %402 = vrot.lane.b32.xlu1 %v382_v23, %s843_s7  ;;  %v369_v17 = vsub.f32 0.0, %v360_v5  ;;  %v759_v52 = vpop.eup %758  ;;  %v551_v55 = vmul.f32 0.6931472, %v757_v46 }
 0x158   :  { %v761_v16 = vpop.eup %760  ;;  %v591_v54 = vsub.f32 %v549_v50, %v1221_v0  ;;  %v1230_v6 = vmul.f32 0.6931472, %v759_v52 }
 0x159   :  { %v377_v2 = vsel %vm66_vm5, %v369_v17, 0.0  ;;  %v763_v24 = vpop.eup %762  ;;  %v553_v63 = vmul.f32 0.6931472, %v761_v16  ;;  %v603_v14 = vpop.permute.xlu1 %602 }
 0x15a   :  { %v385_v58 = vsel %vm65_vm6, %v360_v5, %v377_v2  ;;  %v592_v62 = vsub.f32 %v551_v55, %v1230_v6  ;;  %v1238_v7 = vmul.f32 0.6931472, %v763_v24  ;;  %v455_v37 = vpop.permute.xlu0 %454 }
 0x15b   :  { %406 = vrot.lane.b32.xlu0 %v384_v15, %s843_s7  ;;  %396 = vrot.lane.b32.xlu1 %v379_v34, %s843_s7 }
 0x15c   :  { %v593_v10 = vsub.f32 %v553_v63, %v1238_v7 }
 0x15d   :  { %v459_v9 = vpop.permute.xlu1 %458 }
 0x15e   :  { %v501_v18 = vpop.permute.xlu0 %500 }
 0x15f   :  { %610 = vrot.lane.b32.xlu0 %v590_v38, %s843_s7  ;;  %400 = vrot.lane.b32.xlu1 %v381_v39, %s843_s7 }
 0x161   :  { %v607_v20 = vpop.permute.xlu1 %606 }
 0x162   :  { %v503_v19 = vpop.permute.xlu0 %502 }
 0x163   :  { %510 = vrot.lane.b32.xlu0 %v488_v40, %s843_s7  ;;  %508 = vrot.lane.b32.xlu1 %v487_v43, %s843_s7 }
 0x165   :  { %v1244_v23 = vpop.permute.xlu1 %460 }
 0x166   :  { %v605_v21 = vpop.permute.xlu0 %604 }
 0x167   :  { %404 = vrot.lane.b32.xlu0 %v383_v61, %s843_s7  ;;  %464 = vrot.lane.b32.xlu1 %v441_v44, %s843_s7 }
 0x169   :  { %v609_v26 = vpop.permute.xlu1 %608 }
 0x16a   :  { %v505_v25 = vpop.permute.xlu0 %504 }
 0x16b   :  { %408 = vrot.lane.b32.xlu0 %v385_v58, %s843_s7  ;;  %612 = vrot.lane.b32.xlu1 %v591_v54, %s843_s7 }
 0x16e   :  { %v507_v27 = vpop.permute.xlu0 %506 }
 0x16f   :  { %512 = vrot.lane.b32.xlu0 %v489_v59, %s843_s7  ;;  %614 = vrot.lane.b32.xlu1 %v592_v62, %s843_s7 }
 0x172   :  { %v1246_v28 = vpop.permute.xlu0 %462 }
 0x173   :  { %616 = vrot.lane.b32.xlu0 %v593_v10, %s843_s7 }
 0x19d   :  { %v251_v3 = vpop.permute.xlu1 %250 }
 0x19e   :  { %v274_v42 = vadd.f32 %v251_v3, %v1119_v31 }
 0x1a1   :  { %v255_v30 = vpop.permute.xlu1 %254 }
 0x1a2   :  { %v276_v38 = vadd.f32 %v255_v30, %v1125_v4 }
 0x1b9   :  { %v259_v33 = vpop.permute.xlu0 %258 }
 0x1ba   :  { %v278_v40 = vadd.f32 %v259_v33, %v1135_v53 }
 0x1bd   :  { %v253_v15 = vpop.permute.xlu0 %252  ;;  %v263_v34 = vpop.permute.xlu1 %262 }
 0x1be   :  { %v275_v17 = vadd.f32 %v253_v15, %v1144_v48  ;;  %v280_v48 = vadd.f32 %v263_v34, %v1148_v49 }
 0x1c1   :  { %v257_v35 = vpop.permute.xlu0 %256  ;;  %v265_v36 = vpop.permute.xlu1 %264 }
 0x1c2   :  { %v277_v55 = vadd.f32 %v257_v35, %v1159_v32 }
 0x1c5   :  { %v261_v57 = vpop.permute.xlu0 %260  ;;  %v399_v39 = vpop.permute.xlu1 %398 }
 0x1c6   :  { %v420_v41 = vadd.f32 %v399_v39, %v276_v38 }
 0x1c8   :  { %v428_v43 = vmul.f32 0.17219259, %v420_v41  ;;  %v281_v41 = vadd.f32 %v265_v36, %v1163_v1 }
 0x1c9   :  { %v395_v5 = vpop.permute.xlu0 %394  ;;  %v403_v44 = vpop.permute.xlu1 %402 }
 0x1ca   :  { %v418_v46 = vadd.f32 %v395_v5, %v274_v42  ;;  %v422_v47 = vadd.f32 %v403_v44, %v278_v40  ;;  %v476_v52 = vadd.f32 %v455_v37, %v428_v43 }
 0x1cc   :  { %v426_v50 = vmul.f32 0.17219259, %v418_v46  ;;  %v430_v2 = vmul.f32 0.17219259, %v422_v47  ;;  %v524_v53 = vadd.f32 %v503_v19, %v476_v52  ;;  %v279_v19 = vadd.f32 %v261_v57, %v1174_v60 }
 0x1cd   :  { %v407_v61 = vpop.permute.xlu0 %406  ;;  %v397_v16 = vpop.permute.xlu1 %396 }
 0x1ce   :  { %v474_v4 = vadd.f32 %v1155_v51, %v426_v50  ;;  %v419_v54 = vadd.f32 %v397_v16, %v275_v17  ;;  %v478_v62 = vadd.f32 %v459_v9, %v430_v2  ;;  %v424_v51 = vadd.f32 %v407_v61, %v280_v48 }
 0x1d0   :  { %v522_v31 = vadd.f32 %v499_v12, %v474_v4  ;;  %v427_v24 = vmul.f32 0.17219259, %v419_v54  ;;  %v526_v38 = vadd.f32 %v507_v27, %v478_v62  ;;  %v628_v12 = vmul.f32 %v607_v20, %v524_v53 }
 0x1d1   :  { %v611_v58 = vpop.permute.xlu0 %610  ;;  %v401_v59 = vpop.permute.xlu1 %400 }
 0x1d2   :  { %v475_v63 = vadd.f32 %v453_v45, %v427_v24  ;;  %v421_v10 = vadd.f32 %v401_v59, %v277_v55  ;;  %v626_v3 = vmul.f32 %v603_v14, %v522_v31  ;;  %v432_v14 = vmul.f32 0.17219259, %v424_v51 }
 0x1d4   :  { %v523_v37 = vadd.f32 %v501_v18, %v475_v63  ;;  %v429_v30 = vmul.f32 0.17219259, %v421_v10  ;;  %642 = vrot.lane.b32.xlu1 %v626_v3, %s840_s1  ;;  %v630_v18 = vmul.f32 %v611_v58, %v526_v38  ;;  %v480_v20 = vadd.f32 %v1246_v28, %v432_v14 }
 0x1d5   :  { %v511_v33 = vpop.permute.xlu0 %510  ;;  %v509_v15 = vpop.permute.xlu1 %508 }
 0x1d6   :  { %v477_v32 = vadd.f32 %v457_v13, %v429_v30  ;;  %v627_v35 = vmul.f32 %v605_v21, %v523_v37  ;;  %v528_v27 = vadd.f32 %v511_v33, %v480_v20 }
 0x1d8   :  { %v525_v39 = vadd.f32 %v505_v25, %v477_v32  ;;  %646 = vrot.lane.b32.xlu1 %v628_v12, %s840_s1  ;;  %644 = vrot.lane.b32.xlu0 %v627_v35, %s840_s1 }
 0x1d9   :  { %v405_v45 = vpop.permute.xlu0 %404  ;;  %v465_v49 = vpop.permute.xlu1 %464 }
 0x1da   :  { %v423_v9 = vadd.f32 %v405_v45, %v279_v19  ;;  %v629_v34 = vmul.f32 %v609_v26, %v525_v39 }
 0x1dc   :  { %v431_v42 = vmul.f32 0.17219259, %v423_v9  ;;  %650 = vrot.lane.b32.xlu1 %v630_v18, %s840_s1  ;;  %648 = vrot.lane.b32.xlu0 %v629_v34, %s840_s1 }
 0x1dd   :  { %v409_v13 = vpop.permute.xlu0 %408  ;;  %v613_v60 = vpop.permute.xlu1 %612 }
 0x1de   :  { %v479_v21 = vadd.f32 %v1244_v23, %v431_v42  ;;  %v425_v25 = vadd.f32 %v409_v13, %v281_v41 }
 0x1e0   :  { %v433_v57 = vmul.f32 0.17219259, %v425_v25  ;;  %v527_v40 = vadd.f32 %v509_v15, %v479_v21 }
 0x1e1   :  { %v513_v43 = vpop.permute.xlu0 %512  ;;  %v615_v5 = vpop.permute.xlu1 %614 }
 0x1e2   :  { %v631_v26 = vmul.f32 %v613_v60, %v527_v40  ;;  %v481_v44 = vadd.f32 %v465_v49, %v433_v57  ;;  %v632_v1 = vmul.f32 %v615_v5, %v528_v27 }
 0x1e4   :  { %v529_v36 = vadd.f32 %v513_v43, %v481_v44  ;;  %652 = vrot.lane.b32.xlu0 %v631_v26, %s840_s1  ;;  %654 = vrot.lane.b32.xlu1 %v632_v1, %s840_s1 }
 0x1e5   :  { %v617_v46 = vpop.permute.xlu0 %616 }
 0x1e6   :  { %v633_v47 = vmul.f32 %v617_v46, %v529_v36 }
 0x1e8   :  { %656 = vrot.lane.b32.xlu0 %v633_v47, %s840_s1 }
 0x246   :  { %v643_v28 = vpop.permute.xlu1 %642 }
 0x247   :  { %v666_v23 = vadd.f32 %v643_v28, %v1083_v56 }
 0x249   :  { %v675_v16 = vsel %vm674_vm7, %v666_v23, 0.0 }
 0x24a   :  { %v645_v17 = vpop.permute.xlu0 %644  ;;  %v647_v50 = vpop.permute.xlu1 %646 }
 0x24b   :  { %v667_v52 = vadd.f32 %v645_v17, %v1099_v22  ;;  %v668_v61 = vadd.f32 %v647_v50, %v1091_v8 }
 0x24d   :  { %v676_v4 = vsel %vm674_vm7, %v667_v52, 0.0  ;;  %v678_v55 = vsel %vm674_vm7, %v668_v61, 0.0 }
 0x24e   :  { %v677_v2 = vadd.f32 %v676_v4, %v675_v16  ;;  %v649_v54 = vpop.permute.xlu0 %648  ;;  %v651_v53 = vpop.permute.xlu1 %650 }
 0x24f   :  { %v669_v31 = vadd.f32 %v649_v54, %v1103_v11  ;;  %v670_v58 = vadd.f32 %v651_v53, %v1197_v29 }
 0x250   :  { %v679_v24 = vadd.f32 %v678_v55, %v677_v2 }
 0x251   :  { %v680_v56 = vsel %vm674_vm7, %v669_v31, 0.0  ;;  %v682_v8 = vsel %vm674_vm7, %v670_v58, 0.0 }
 0x252   :  { %v681_v59 = vadd.f32 %v680_v56, %v679_v24 }
 0x254   :  { %v683_v3 = vadd.f32 %v682_v8, %v681_v59 }
 0x256   :  { %v653_v22 = vpop.permute.xlu0 %652  ;;  %v655_v62 = vpop.permute.xlu1 %654 }
 0x257   :  { %v671_v63 = vadd.f32 %v653_v22, %v1221_v0  ;;  %v672_v10 = vadd.f32 %v655_v62, %v1230_v6 }
 0x259   :  { %v684_v48 = vsel %vm674_vm7, %v671_v63, 0.0  ;;  %v686_v30 = vsel %vm674_vm7, %v672_v10, 0.0 }
 0x25a   :  { %v685_v37 = vadd.f32 %v684_v48, %v683_v3  ;;  %v657_v11 = vpop.permute.xlu0 %656 }
 0x25b   :  { %v673_v51 = vadd.f32 %v657_v11, %v1238_v7 }
 0x25c   :  { %v687_v33 = vadd.f32 %v686_v30, %v685_v37 }
 0x25d   :  { %v688_v29 = vsel %vm674_vm7, %v673_v51, 0.0 }
 0x25e   :  { %v689_v15 = vadd.f32 %v688_v29, %v687_v33 }
 0x260   :  { %690 = vadd.xlane.f32.xlu1 %v689_v15 }
 0x2ed   :  { %v691_v38 = vpop.xlane.xlu1 %690 }
 0x2ee   :  { %v692_v32 = vrot.slane %v691_v38, 4 }
 0x2f0   :  { %v693_v12 = vadd.f32 %v692_v32, %v691_v38 }
 0x2f2   :  { %v694_v0 = vrot.slane %v693_v12, 2 }
 0x2f4   :  { %v695_v35 = vadd.f32 %v694_v0, %v693_v12 }
 0x2f6   :  { %v696_v6 = vrot.slane %v695_v35, 1 }
 0x2f8   :  { %v697_v19 = vadd.f32 %v696_v6, %v695_v35 }
 0x2fa   :  { %718 = vpush %v697_v19 }
 0x32b   :  { %s719_s11 = spop %718 }
 0x32c   :  { %v699_v39 = vstv %s719_s11 }
 0x32d   :  { %701 = vst [vmem:[#allocation7] sm:$0xff] %v699_v39 }
 0x32e   :  { %819 = shalt.err (!%p816_p6)
}
 0x32f   :  { %s820_s15 = scalar_lea.hbm %s1297_s2, 128 }
 0x330   :  { %p821_p7 = scmp.ne.s32.totalorder %s1297_s2, %s820_s15  ;;  %p824_p8 = scmp.lt.u32.totalorder %s820_s15, %s1297_s2 }
 0x332   :  { %p826_p9 = pnand %p824_p8, %p821_p7 }
 0x334   :  { %829 = shalt.err (!%p826_p9)
}
 0x335   :  { %711 = dma.vmem_to_hbm [thread:$0]  %s709_s10, 128, %s1297_s2, [#allocation4]  }
 0x336   :  { %834 = dma.done.wait [#allocation4], 128  }
 0x337   :  { %835 = vsyncadd [#allocation4], 4294967168 }
 0x338   :  { %715 = vsyncpa [#allocation3], 1 }
 0x339   :  { %716 = vsyncpa [#allocation6], 1 }
 0x33a   :  { %717 = vsyncpa [#allocation4], 1 }

</bundles_post_ra>
